<compile_context>
chip_gen: v5e
topology: v5e:2x2
jax: 0.10.0
libtpu: 0.0.40
codegen_flags: <defaults>
</compile_context>

<pallas_src>
import functools
import math

import jax
import jax.numpy as jnp
from jax.experimental import pallas as pl
from jax.experimental.pallas import tpu as pltpu


# Large finite negative for masked scores (avoids NaN in the online softmax).
_MASK_VALUE = -1e30
# 32 MiB: within the default scoped limit on v6e and only 50% of v7x's 64 MiB
# physical VMEM.  (Per-chip derivation via pltpu.get_tpu_info is possible but
# kept static here for portability.)
_VMEM_LIMIT = 32 * 1024 * 1024


# --------------------------------------------------------------------------
# Projection pass: y[b, l, :] = x[b, l, :] @ W   (W already transposed/packed)
# --------------------------------------------------------------------------
def _proj_kernel(x_ref, w_ref, o_ref):
    o_ref[0] = jnp.dot(x_ref[0], w_ref[...],
                       preferred_element_type=jnp.float32).astype(o_ref.dtype)


def _project(x, w, block_rows):
    """x: (B, Lp, Din); w: (Din, N) in compute dtype -> (B, Lp, N)."""
    B, Lp, Din = x.shape
    N = w.shape[1]
    bl = block_rows
    # NOTE: weight kept as one (Din, N) block; for very large Din/N this pass
    # would need K/N tiling (not needed at the sizes exercised here).
    return pl.pallas_call(
        _proj_kernel,
        out_shape=jax.ShapeDtypeStruct((B, Lp, N), w.dtype),
        grid_spec=pltpu.PrefetchScalarGridSpec(
            num_scalar_prefetch=0,
            grid=(B, Lp // bl),
            in_specs=[
                pl.BlockSpec((1, bl, Din), lambda b, li: (b, li, 0)),
                pl.BlockSpec((Din, N), lambda b, li: (0, 0)),
            ],
            out_specs=pl.BlockSpec((1, bl, N), lambda b, li: (b, li, 0)),
        ),
        compiler_params=pltpu.CompilerParams(
            dimension_semantics=("parallel", "parallel"),
            vmem_limit_bytes=_VMEM_LIMIT,
        ),
    )(x, w)


# --------------------------------------------------------------------------
# Flash-attention kernel (online softmax, head-major scratch, fused out-proj)
# --------------------------------------------------------------------------
def _flash_kernel(*refs, use_mask: bool, mask_shared: bool):
    # Ref order: [block_summary (SMEM prefetch, only if use_mask)],
    #            q, k, v, wproj, [mask], out, m_scr, l_scr, acc_scr
    if use_mask:
        (bsum_ref, q_ref, k_ref, v_ref, wproj_ref, mask_ref,
         o_ref, m_scr, l_scr, acc_scr) = refs
    else:
        (q_ref, k_ref, v_ref, wproj_ref,
         o_ref, m_scr, l_scr, acc_scr) = refs
        bsum_ref = None
        mask_ref = None

    H = wproj_ref.shape[0]        # static
    ki = pl.program_id(2)
    nk = pl.num_programs(2)

    @pl.when(ki == 0)
    def _init():
        m_scr[...] = jnp.full_like(m_scr, _MASK_VALUE)
        l_scr[...] = jnp.zeros_like(l_scr)
        acc_scr[...] = jnp.zeros_like(acc_scr)

    def _attend():
        q = q_ref[0]                                    # (H, bq, hd) compute dtype
        k = k_ref[0]                                    # (H, bk, hd)
        v = v_ref[0]                                    # (H, bk, hd)
        # Head-batched QK^T (Q already pre-scaled); f32 accumulation.
        s = jnp.einsum('hqd,hkd->hqk', q, k,
                       preferred_element_type=jnp.float32)  # (H, bq, bk)
        if use_mask:
            keep = mask_ref[0] != 0                     # (bq, bk) bool
            s = jnp.where(keep[None, :, :], s, _MASK_VALUE)

        m_prev = m_scr[...]                             # (H, bq, 1) f32
        m_new = jnp.maximum(m_prev, jnp.max(s, axis=-1, keepdims=True))
        alpha = jnp.exp(m_prev - m_new)                 # rescale factor
        p = jnp.exp(s - m_new)                          # (H, bq, bk) f32
        l_scr[...] = alpha * l_scr[...] + jnp.sum(p, axis=-1, keepdims=True)
        acc_scr[...] = alpha * acc_scr[...] + jnp.einsum(
            'hqk,hkd->hqd', p.astype(v.dtype), v,
            preferred_element_type=jnp.float32)
        m_scr[...] = m_new

    if use_mask:
        b = pl.program_id(0)
        qi = pl.program_id(1)
        nq = pl.num_programs(1)
        if mask_shared:
            idx = qi * nk + ki
        else:
            idx = (b * nq + qi) * nk + ki
        summary = bsum_ref[idx]                         # 0=skip, 1=partial, 2=dense
        pl.when(summary > 0)(_attend)
    else:
        _attend()

    @pl.when(ki == nk - 1)
    def _finalize():
        l = l_scr[...]
        # Rows with no attended key at all (only possible with a mask):
        # emit 0 instead of NaN/inf.  (PyTorch would emit NaN.)
        l = jnp.where(l > 0.0, l, 1.0)
        y = (acc_scr[...] * (1.0 / l)).astype(q_ref.dtype)   # (H, bq, hd)
        # Fused output projection: sum_h y[h] @ Wproj[h]  -> (bq, D), f32 acc.
        o = None
        for h in range(H):                              # finalize-only, small H
            t = jnp.dot(y[h], wproj_ref[h], preferred_element_type=jnp.float32)
            o = t if o is None else o + t
        o_ref[0] = o.astype(o_ref.dtype)


# --------------------------------------------------------------------------
# Wrapper
# --------------------------------------------------------------------------
def attention_pallas(x, w_qkv, w_proj, mask=None, *, head_dim: int,
                     block_q=None, block_kv=None, compute_dtype=None):
    """Multi-head self-attention matching PyTorch Attention.forward.

    x:      (B, L, D)
    w_qkv:  (3*D, D)  nn.Linear weight layout (out_features, in_features)
    w_proj: (D, D)    nn.Linear weight layout
    mask:   optional bool mask, (B, L, L) or shared (L, L); True == attend.
    """
    B, L, D = x.shape
    assert D % head_dim == 0
    H = D // head_dim
    scale = head_dim ** (-0.5)
    out_dtype = x.dtype
    if compute_dtype is None:
        # bf16 MXU operands for f32 inputs (f32 accumulation everywhere).
        compute_dtype = jnp.bfloat16 if x.dtype == jnp.float32 else x.dtype
    cdt = compute_dtype

    # ---- block sizes & padding (no (L, L)-sized fallback tiles) ----
    def _rup(a, m):
        return (a + m - 1) // m * m

    if block_q is None:
        block_q = 128 if L >= 128 else _rup(L, 8)
    if block_kv is None:
        # bkv=256 helps v6e/v7x (256-wide MXU); 128 is the safe universal default.
        block_kv = 128 if L >= 128 else _rup(L, 8)
    Lp = _rup(L, math.lcm(block_q, block_kv))
    pad = Lp - L
    nq, nk = Lp // block_q, Lp // block_kv

    # ---- mask / block-summary preparation ----
    use_mask = (mask is not None) or (pad > 0)
    mask_shared = True
    mask_i8 = None
    block_summary = None
    if use_mask:
        if mask is None:
            mask3 = jnp.ones((1, L, L), dtype=bool)      # only padding to mask
        else:
            mask3 = mask if mask.ndim == 3 else mask[None]
            mask3 = mask3.astype(bool)
        Bm = mask3.shape[0]
        assert Bm in (1, B), "mask batch must be 1 (shared) or B"
        if pad > 0:
            mask3 = jnp.pad(mask3, ((0, 0), (0, pad), (0, pad)))  # pad -> False
        mask_shared = (Bm == 1)
        blk = mask3.reshape(Bm, nq, block_q, nk, block_kv)
        any_b = jnp.any(blk, axis=(2, 4))
        all_b = jnp.all(blk, axis=(2, 4))
        block_summary = (any_b.astype(jnp.int32)
                         + all_b.astype(jnp.int32)).reshape(-1)   # (Bm*nq*nk,)
        mask_i8 = mask3.astype(jnp.int8)

    # ---- weight packing (PyTorch layout -> head-major, Q pre-scaled) ----
    # qkv output feature o = h*3hd + s*hd + d  (s: 0=Q,1=K,2=V).
    w = w_qkv.reshape(H, 3, head_dim, D)                 # [h, s, d, din]
    wq = w[:, 0] * scale
    wk = w[:, 1]
    wv = w[:, 2]
    w_qkv_in = jnp.stack([wq, wk, wv], axis=0).reshape(3 * D, D).T.astype(cdt)
    w_proj_in = w_proj.T.reshape(H, head_dim, D).astype(cdt)      # (H, hd, D)

    # ---- pass 1: QKV projection (Pallas matmul), head-major Q/K/V in HBM ----
    x_c = x.astype(cdt)
    if pad > 0:
        x_c = jnp.pad(x_c, ((0, 0), (0, pad), (0, 0)))
    qkv = _project(x_c, w_qkv_in, block_rows=block_q)    # (B, Lp, 3D) in cdt
    qkv = qkv.reshape(B, Lp, 3, H, head_dim).transpose(2, 0, 3, 1, 4)
    q, k, v = qkv[0], qkv[1], qkv[2]                     # each (B, H, Lp, hd)

    # ---- pass 2: flash attention + fused output projection ----
    def im(f):
        if use_mask:
            return lambda b, qi, ki, bs: f(b, qi, ki)    # prefetch ref trails
        return f

    in_specs = [
        pl.BlockSpec((1, H, block_q, head_dim), im(lambda b, qi, ki: (b, 0, qi, 0))),
        pl.BlockSpec((1, H, block_kv, head_dim), im(lambda b, qi, ki: (b, 0, ki, 0))),
        pl.BlockSpec((1, H, block_kv, head_dim), im(lambda b, qi, ki: (b, 0, ki, 0))),
        # Constant-index weight block (could be single-buffered for very large D).
        pl.BlockSpec((H, head_dim, D), im(lambda b, qi, ki: (0, 0, 0))),
    ]
    inputs = [q, k, v, w_proj_in]
    if use_mask:
        if mask_shared:
            in_specs.append(pl.BlockSpec((1, block_q, block_kv),
                                         im(lambda b, qi, ki: (0, qi, ki))))
        else:
            in_specs.append(pl.BlockSpec((1, block_q, block_kv),
                                         im(lambda b, qi, ki: (b, qi, ki))))
        inputs.append(mask_i8)

    kernel = functools.partial(_flash_kernel, use_mask=use_mask,
                               mask_shared=mask_shared)

    flash = pl.pallas_call(
        kernel,
        out_shape=jax.ShapeDtypeStruct((B, Lp, D), out_dtype),
        grid_spec=pltpu.PrefetchScalarGridSpec(
            num_scalar_prefetch=1 if use_mask else 0,
            grid=(B, nq, nk),
            in_specs=in_specs,
            out_specs=pl.BlockSpec((1, block_q, D), im(lambda b, qi, ki: (b, qi, 0))),
            scratch_shapes=[
                pltpu.VMEM((H, block_q, 1), jnp.float32),        # running max
                pltpu.VMEM((H, block_q, 1), jnp.float32),        # running denom
                pltpu.VMEM((H, block_q, head_dim), jnp.float32),  # accumulator
            ],
        ),
        compiler_params=pltpu.CompilerParams(
            dimension_semantics=("parallel", "parallel", "arbitrary"),
            vmem_limit_bytes=_VMEM_LIMIT,
        ),
    )

    call_args = ([block_summary] if use_mask else []) + inputs
    out = flash(*call_args)
    if pad > 0:
        out = out[:, :L, :]
    return out


# --------------------------------------------------------------------------
# Pure-JAX reference (mirrors the PyTorch forward exactly)
# --------------------------------------------------------------------------
def attention_reference(x, w_qkv, w_proj, mask=None, *, head_dim: int):
    B, L, D = x.shape
    H = D // head_dim
    scale = head_dim ** (-0.5)
    qkv = x @ w_qkv.T                                               # (B, L, 3D)
    qkv = qkv.reshape(B, L, H, 3 * head_dim).transpose(0, 2, 1, 3)  # (B,H,L,3hd)
    q, k, v = jnp.split(qkv, 3, axis=-1)
    attn = jnp.einsum('bhld,bhmd->bhlm', q, k) * scale
    if mask is not None:
        m = mask if mask.ndim == 3 else mask[None]
        m = jnp.broadcast_to(m, (B, L, L))
        attn = jnp.where(m[:, None, :, :], attn, -jnp.inf)
    attn = jax.nn.softmax(attn, axis=-1)
    y = jnp.einsum('bhlm,bhmd->bhld', attn, v)
    y = y.transpose(0, 2, 1, 3).reshape(B, L, D)
    return y @ w_proj.T


if __name__ == "__main__":
    def causal(n):
        return jnp.tril(jnp.ones((n, n), dtype=bool))

    def check(name, out, ref, atol, rtol):
        out = out.astype(jnp.float32)
        err = float(jnp.max(jnp.abs(out - ref)))
        assert bool(jnp.allclose(out, ref, atol=atol, rtol=rtol)), \
            f"{name}: max abs err {err}"

    # --- Small config (B=2, L=8, D=32, head_dim=16 -> H=2), exact f32 path ---
    B, L, D, hd = 2, 8, 32, 16
    k0, k1, k2, k3 = jax.random.split(jax.random.PRNGKey(0), 4)
    x = jax.random.normal(k0, (B, L, D), dtype=jnp.float32)
    w_qkv = jax.random.normal(k1, (3 * D, D), dtype=jnp.float32) * (D ** -0.5)
    w_proj = jax.random.normal(k2, (D, D), dtype=jnp.float32) * (D ** -0.5)

    mask_b = jnp.broadcast_to(causal(L), (B, L, L))
    out = jax.block_until_ready(attention_pallas(
        x, w_qkv, w_proj, mask_b, head_dim=hd, compute_dtype=jnp.float32))
    check("small/causal/f32", out,
          attention_reference(x, w_qkv, w_proj, mask_b, head_dim=hd), 2e-3, 2e-3)

    out = jax.block_until_ready(attention_pallas(
        x, w_qkv, w_proj, None, head_dim=hd, compute_dtype=jnp.float32))
    check("small/nomask/f32", out,
          attention_reference(x, w_qkv, w_proj, None, head_dim=hd), 2e-3, 2e-3)

    rmask = jax.random.bernoulli(k3, 0.5, (B, L, L)) | jnp.eye(L, dtype=bool)[None]
    out = jax.block_until_ready(attention_pallas(
        x, w_qkv, w_proj, rmask, head_dim=hd, compute_dtype=jnp.float32))
    check("small/random-mask/f32", out,
          attention_reference(x, w_qkv, w_proj, rmask, head_dim=hd), 2e-3, 2e-3)

    # --- Flash-tiled config (B=2, L=256, D=128, head_dim=64), shared causal
    #     mask, default bf16 MXU operands, 128x128 tiles -> exercises the
    #     skip / partial / dense block-summary paths. ---
    B2, L2, D2, hd2 = 2, 256, 128, 64
    k4, k5, k6 = jax.random.split(jax.random.PRNGKey(1), 3)
    x2 = jax.random.normal(k4, (B2, L2, D2), dtype=jnp.float32)
    w_qkv2 = jax.random.normal(k5, (3 * D2, D2), dtype=jnp.float32) * (D2 ** -0.5)
    w_proj2 = jax.random.normal(k6, (D2, D2), dtype=jnp.float32) * (D2 ** -0.5)

    out = jax.block_until_ready(attention_pallas(
        x2, w_qkv2, w_proj2, causal(L2), head_dim=hd2, block_q=128, block_kv=128))
    check("large/causal/bf16", out,
          attention_reference(x2, w_qkv2, w_proj2, causal(L2), head_dim=hd2),
          7e-2, 7e-2)

    out = jax.block_until_ready(attention_pallas(
        x2, w_qkv2, w_proj2, None, head_dim=hd2, block_q=128, block_kv=128))
    check("large/nomask/bf16", out,
          attention_reference(x2, w_qkv2, w_proj2, None, head_dim=hd2),
          7e-2, 7e-2)

    # --- Non-multiple-of-128 length: L=200 padded to 256 inside the wrapper ---
    L3 = 200
    x3 = x2[:, :L3, :]
    out = jax.block_until_ready(attention_pallas(
        x3, w_qkv2, w_proj2, None, head_dim=hd2, compute_dtype=jnp.float32))
    check("padded/nomask/f32", out,
          attention_reference(x3, w_qkv2, w_proj2, None, head_dim=hd2), 2e-3, 2e-3)

    print("KERNEL_OK")
</pallas_src>

<mosaic_0001>
module attributes {stable_mosaic.version = 11 : i64} {
  func.func @_proj_kernel(%arg0: i32, %arg1: i32, %arg2: memref<1x8x32xf32, #tpu.memory_space<vmem>>, %arg3: memref<32x96xf32, #tpu.memory_space<vmem>>, %arg4: memref<1x8x96xf32, #tpu.memory_space<vmem>>) attributes {dimension_semantics = [#tpu.dimension_semantics<parallel>, #tpu.dimension_semantics<parallel>], iteration_bounds = array<i64: 2, 1>, scalar_prefetch = 0 : i64, scratch_operands = 0 : i64, tpu.core_type = #tpu.core_type<tc>, window_params = [{transform_indices = @transform_0, window_bounds = array<i64: 1, 8, 32>}, {pipeline_mode = #tpu.pipeline_mode<synchronous>, transform_indices = @transform_1, window_bounds = array<i64: 32, 96>}, {transform_indices = @transform_2, window_bounds = array<i64: 1, 8, 96>}]} {
    %c0 = arith.constant 0 : index
    %c0_0 = arith.constant 0 : index
    %c0_1 = arith.constant 0 : index
    %0 = vector.load %arg2[%c0, %c0_0, %c0_1] : memref<1x8x32xf32, #tpu.memory_space<vmem>>, vector<1x8x32xf32>
    %1 = vector.shape_cast %0 : vector<1x8x32xf32> to vector<8x32xf32>
    %c0_2 = arith.constant 0 : index
    %c0_3 = arith.constant 0 : index
    %2 = vector.load %arg3[%c0_2, %c0_3] : memref<32x96xf32, #tpu.memory_space<vmem>>, vector<32x96xf32>
    %cst = arith.constant dense<0.000000e+00> : vector<8x96xf32>
    %3 = tpu.matmul %1, %2, %cst {dimension_numbers = #tpu.dot_dimension_numbers<[1], [0], [0], [1], [0, 0, 1, 1], [], []>} : vector<8x32xf32>, vector<32x96xf32>, vector<8x96xf32> -> vector<8x96xf32>
    %c0_4 = arith.constant 0 : index
    %c0_5 = arith.constant 0 : index
    %c0_6 = arith.constant 0 : index
    %4 = vector.load %arg4[%c0_4, %c0_5, %c0_6] : memref<1x8x96xf32, #tpu.memory_space<vmem>>, vector<1x8x96xf32>
    %5 = vector.shape_cast %4 : vector<1x8x96xf32> to vector<8x96xf32>
    %6 = vector.shape_cast %3 : vector<8x96xf32> to vector<1x8x96xf32>
    tpu.vector_store %arg4[%c0_4, %c0_5, %c0_6], %6 {strides = array<i32>} : memref<1x8x96xf32, #tpu.memory_space<vmem>>, vector<1x8x96xf32>,
    return
  }
  func.func @transform_0(%arg0: i32, %arg1: i32) -> (i32, i32, i32) {
    %c0_i32 = arith.constant 0 : i32
    %c0_i32_0 = arith.constant 0 : i32
    return %arg0, %arg1, %c0_i32 : i32, i32, i32
  }
  func.func @transform_1(%arg0: i32, %arg1: i32) -> (i32, i32) {
    %c0_i32 = arith.constant 0 : i32
    %c0_i32_0 = arith.constant 0 : i32
    %c0_i32_1 = arith.constant 0 : i32
    return %c0_i32, %c0_i32_0 : i32, i32
  }
  func.func @transform_2(%arg0: i32, %arg1: i32) -> (i32, i32, i32) {
    %c0_i32 = arith.constant 0 : i32
    %c0_i32_0 = arith.constant 0 : i32
    return %arg0, %arg1, %c0_i32 : i32, i32, i32
  }
}

</mosaic_0001>

<bundles_post_ra>
// kernel: tpu_custom_call.1
= control target key start
LH: loop header
LB: loop body
LE: loop exit
PB: predicated region body
PF: predicated region fallthrough
CT: control target
= control target key end

     0   :  { %7 = vsyncpa [#allocation3], 0  ;;  %s733_s0 = inlined_call_operand.hbm [shape: f32[2,8,32], index: 0, kind: input, shape index: {}]   ;;  %s734_s1 = inlined_call_operand.hbm [shape: f32[32,96], index: 1, kind: input, shape index: {}]   ;;  %s735_s2 = inlined_call_operand.hbm [shape: f32[2,8,96], index: 2, kind: output, shape index: {}]  }
   0x1   :  { %9 = vsyncpa [#allocation3 + $0x1], 0 }
   0x2   :  { %10 = vsyncpa [#allocation6], 0 }
   0x3   :  { %11 = vsyncpa [#allocation4], 0 }
   0x4   :  { %13 = vsyncpa [#allocation4 + $0x1], 0  ;;  %s590_s9 = smov 0   ;;  %s592_s10 = smov 0  }
   0x5   :  { %s594_s11 = smov 0   ;;  %s596_s12 = smov 0  }
   0x6   :  { %s598_s13 = smov 0   ;;  %s600_s14 = smov 0  }
   0x7 LB: > { %s333_s15 = sadd.s32 4294967295, %s570_s14   ;;  %p335_p0 = scmp.ge.s32.totalorder %s570_s14, 1  ;;  %s570_s14 = sphi %s600_s14, %s19_s14   ;;  %s566_s13 = sphi %s598_s13, %s746_s13   ;;  %s562_s12 = sphi %s596_s12, %s745_s12   ;;  %s558_s11 = sphi %s594_s11, %s744_s11   ;;  %s554_s10 = sphi %s592_s10, %s743_s10   ;;  %s550_s9 = sphi %s590_s9, %s742_s9  }
   0x8   : > { %p622_p1 = scmp.eq.s32.totalorder %s333_s15, 0  ;;  %p113_p2 = scmp.lt.s32.totalorder %s570_s14, 3 }
   0x9   : > { %s124_s19 = sshll.u32 %s734_s1, 4  ;;  %s572_s21 = smov [#allocation5]   ;;  %s125_s19 = int_to_ptr.hbm [resolvable:$true] %s124_s19 }
   0xa   : > { %p630_p3 = pnand %p335_p0, %p113_p2  ;;  %s126_s22 = sshll.u32 %s572_s21, 4  ;;  %s127_s22 = int_to_ptr.vmem [resolvable:$true] %s126_s22 }
   0xb   : > { %p337_p6 = scmp.ge.s32.totalorder %s570_s14, 2  ;;  %s573_s23 = smov 128  }
   0xc   : > { %p357_p4 = pneg %p630_p3  ;;  %s574_s24 = smov 8  }
   0xd   : > { %s334_s25 = sadd.s32 4294967294, %s570_s14   ;;  %s31_s26 = sadd.s32 1, %s566_s13 }
   0xe   : > { %p358_p5 = pnand %p357_p4, %p622_p1  ;;  %s40_s27 = sadd.s32 1, %s558_s11 }
   0xf   : > { %p33_p7 = scmp.ge.s32.totalorder %s31_s26, 2  ;;  %p47_p8 = scmp.ne.s32.totalorder %s558_s11, %s554_s10 }
  0x10   : > { %360 = dma.hbm_to_vmem [thread:$0]  (!%p358_p5), %s125_s19, 512, %s127_s22, [#allocation6], %s573_s23, %s573_s23, %s574_s24  }
  0x11   : > { %p48_p9 = scmp.eq.s32.totalorder %s570_s14, 0  ;;  %p53_p10 = scmp.ne.s32.totalorder %s554_s10, %s550_s9 }
  0x12   : > { %s748_s26 = smov (%p33_p7, %s31_s26), 0  ;;  %p100_p13 = scmp.eq.s32.totalorder %s333_s15, 1 }
  0x13   : > { %p649_p11 = por %p48_p9, %p47_p8  ;;  %p655_p12 = por %p622_p1, %p53_p10 }
  0x14   : > { %s35_s30 = ssub.s32 %s566_s13, %s748_s26  ;;  %p106_p2 = scmp.eq.s32.totalorder %s334_s25, 1 }
  0x15   : > { %p38_p0 = scmp.eq.s32.totalorder %s35_s30, 0  ;;  %p661_p4 = por %p100_p13, %p47_p8 }
  0x16   : > { %p370_p5 = scmp.lt.s32.totalorder %s570_s14, 2  ;;  %p669_p7 = por %p106_p2, %p53_p10 }
  0x17   : > { %s667_s4 = scalar_select %p38_p0, %s558_s11, %s40_s27  }
  0x18   : > { %s140_s6 = sand.u32 1, %s558_s11   ;;  %s339_s8 = sshll.u32 %s566_s13, 3 }
  0x19   : > { %s338_s7 = sshll.u32 %s140_s6, 3  ;;  %s149_s15 = scalar_lea.hbm %s733_s0, %s339_s8 }
  0x1a   : > { %s144_s19 = scalar_lea.vmem [#allocation2], %s338_s7  ;;  %s151_s22 = sshll.u32 %s149_s15, 4  ;;  %s152_s22 = int_to_ptr.hbm [resolvable:$true] %s151_s22 }
  0x1b   : > { %s153_s21 = sshll.u32 %s144_s19, 4  ;;  %p362_p8 = pnand %p370_p5, %p649_p11  ;;  %s154_s21 = int_to_ptr.vmem [resolvable:$true] %s153_s21 }
  0x1c   : > { %s141_s23 = scalar_lea.sflag [#allocation3], %s140_s6  ;;  %162 = sbr.rel (%p630_p3) target bundleno = 173 (0xad), region = 28 }
  0x1d   : > { %364 = dma.hbm_to_vmem [thread:$0]  (!%p362_p8), %s152_s22, 128, %s154_s21, %s141_s23  }
  0x1e   : > { %s683_s24 = sand.u32 (!%p630_p3), 1, %s554_s10  }
  0x1f   : > { %s341_s25 = sshll.u32 (!%p630_p3), %s683_s24, 3  ;;  %s165_s27 = scalar_lea.sflag (!%p630_p3), [#allocation3], %s683_s24 }
  0x20   : > { %s168_s30 = scalar_lea.vmem (!%p630_p3), [#allocation2], %s341_s25 }
  0x21   : > { %537 = dma.done.wait (%p655_p12), %s165_s27, 128  }
  0x22   : > { %539 = vsyncadd (%p655_p12), %s165_s27, 4294967168 }
  0x23   : > { %541 = dma.done.wait (%p622_p1), [#allocation6], 512  }
  0x24   : > { %543 = vsyncadd (%p622_p1), [#allocation6], 4294966784  ;;  %v199_v0 = vld [vmem:[#allocation5 + $0x18] sm:$0xff]  ;;  %v198_v1 = vld [vmem:[#allocation5 + $0x10] sm:$0xff]  ;;  %vm200_vm0 = vcmask 261120   ;;  %s346_s20 = sshll.u32 %s562_s12, 3 }
  0x25   : > { %216 = vmatpush.msra.mxu0 %v199_v0  ;;  %v197_v2 = vld [vmem:[#allocation5 + $0x8] sm:$0xff]  ;;  %v196_v3 = vld [vmem:[#allocation5] sm:$0xff]  ;;  %v195_v4 = vld [vmem:[%s168_s30] sm:$0xff]  ;;  %s238_s16 = scalar_lea.hbm %s735_s2, %s346_s20  ;;  %s194_s6 = scalar_lea.vmem [#allocation7], %s341_s25  ;;  %vm224_vm1 = vcmask 785408  }
  0x26   : > { %s240_s7 = sshll.u32 %s194_s6, 4  ;;  %s242_s8 = sshll.u32 %s238_s16, 4  ;;  %s241_s7 = int_to_ptr.vmem [resolvable:$true] %s240_s7  ;;  %s243_s8 = int_to_ptr.hbm [resolvable:$true] %s242_s8 }
  0x27   : > { %217 = vmatpush.msra.mxu0 %v198_v1  ;;  %s227_s17 = scalar_lea.sflag [#allocation4], %s683_s24  ;;  %s498_s18 = sshra.s32 %s243_s8, 4  ;;  %s499_s18 = int_to_ptr.hbm [resolvable:$true] %s498_s18 }
  0x28   : > { %s500_s15 = scalar_lea.hbm %s499_s18, 8  ;;  %s504_s21 = scalar_lea.hbm %s735_s2, 16 }
  0x29   : > { %218 = vmatpush.msra.mxu0 %v197_v2  ;;  %p501_p1 = scmp.ne.s32.totalorder %s499_s18, %s500_s15  ;;  %p505_p10 = scmp.lt.s32.totalorder %s499_s18, %s735_s2 }
  0x2a   : > { %p506_p11 = scmp.lt.s32.totalorder %s504_s21, %s500_s15 }
  0x2b   : > { %219 = vmatpush.msra.mxu0 %v196_v3  ;;  %p502_p3 = pnand %p501_p1, %p661_p4 }
  0x2c   : > { %344 = vmatmul.msk.f32.vlgmr.msra.gmra.mxu0 %vm200_vm0, %v195_v4  ;;  %p507_p12 = por %p506_p11, %p505_p10 }
  0x2d   : > { %p503_p9 = pneg %p502_p3 }
  0x2f   : > { %p508_p13 = pnand %p507_p12, %p503_p9 }
  0xa9   : > { %v221_v5 = vpop.f32.mrf.mxu0 }
  0xaa   : > { %225 = vst.msk [vmem:[%s194_s6] sm:$0xff] %vm224_vm1, %v221_v5 }
  0xab   : > { %511 = shalt.err (!%p508_p13)
}
  0xac   : > { %355 = dma.vmem_to_hbm [thread:$0]  (%p661_p4), %s241_s7, 128, %s243_s8, %s227_s17  }
  0xad PF: > { %s254_s24 = sand.u32 1, %s550_s9   ;;  %p366_p0 = pnand %p337_p6, %p669_p7 }
  0xae   : > { %s255_s25 = scalar_lea.sflag [#allocation4], %s254_s24 }
  0xaf   : > { %p367_p2 = pneg %p366_p0 }
  0xb1   : > { %545 = dma.done.wait (%p367_p2), %s255_s25, 128  }
  0xb2   : > { %547 = vsyncadd (%p367_p2), %s255_s25, 4294967168  ;;  %s19_s14 = sadd.s32 1, %s570_s14   ;;  %s742_s9 = smov %s554_s10 }
  0xb3   : > { %p16_p5 = scmp.ge.s32.totalorder %s19_s14, 4   ;;  %s743_s10 = smov %s558_s11 }
  0xb4   : > { %s744_s11 = smov %s667_s4  ;;  %s745_s12 = smov %s566_s13 }
  0xb5   : > { %s746_s13 = smov %s748_s26  ;;  %18 = sbr.rel (!%p16_p5) target bundleno = 7 (0x7), region = 77 }
  0xba   :  { %261 = vsyncpa [#allocation3], 1 }
  0xbb   :  { %263 = vsyncpa [#allocation3 + $0x1], 1 }
  0xbc   :  { %264 = vsyncpa [#allocation6], 1 }
  0xbd   :  { %265 = vsyncpa [#allocation4], 1 }
  0xbe   :  { %267 = vsyncpa [#allocation4 + $0x1], 1 }

</bundles_post_ra>
